<compile_context>
chip_gen: v7x
topology: tpu7x:2x2x1
jax: 0.10.0
libtpu: 0.0.40
codegen_flags: <defaults>
</compile_context>

<pallas_src>
import math
import functools

import jax
import jax.numpy as jnp
from jax.experimental import pallas as pl
from jax.experimental.pallas import tpu as pltpu


# ----------------------------------------------------------------------------
# Positional-encoding table (same math as the PyTorch __init__; plain-JAX glue)
# ----------------------------------------------------------------------------
def _make_pe_table(dim_size: int, max_len: int = 5000) -> jnp.ndarray:
    position = jnp.arange(0, max_len, dtype=jnp.float32)[:, None]            # (max_len, 1)
    div_term = jnp.exp(
        jnp.arange(0, dim_size, 2, dtype=jnp.float32) * (-math.log(10000.0) / dim_size)
    )                                                                        # (dim/2,)
    pe = jnp.zeros((max_len, dim_size), dtype=jnp.float32)
    pe = pe.at[:, 0::2].set(jnp.sin(position * div_term))
    pe = pe.at[:, 1::2].set(jnp.cos(position * div_term))
    return pe                                                                # (max_len, dim)


# ----------------------------------------------------------------------------
# Layout / tiling heuristics
# ----------------------------------------------------------------------------
_BLOCK_BYTE_TARGET = 4 * 1024 * 1024   # per x/out block -> 2x-buffered x+out ~ 16 MiB
_ROW_CAP = 256                          # max rows per block (multiple of 8)
_VMEM_LIMIT_FLOOR = 32 << 20
_VMEM_LIMIT_CEIL = 48 << 20            # stays inside v7x's 64 MiB physical VMEM


def _round_down(x: int, m: int) -> int:
    return (x // m) * m


def _divisors(n: int):
    return [d for d in range(1, n + 1) if n % d == 0]


def _choose_fold(B: int, S: int, D: int) -> int:
    """For small batch, fold S1 (divisor of S) sequence rows into the row axis.

    Prefers a lane-dense column axis (multiple of 128) and full sublane
    packing (rows >= 8, ideally multiple of 8)."""
    if B >= 8:
        return 1
    best, best_key = 1, None
    for s1 in _divisors(S):
        rows, cols = B * s1, (S // s1) * D
        # A fold must admit a legal row-block shape: either a multiple-of-8
        # divisor of s1, or a full-rows block (B == 1) within the row cap.
        if s1 > 1 and s1 % 8 != 0 and not (B == 1 and s1 <= _ROW_CAP):
            continue
        key = (cols % 128 == 0, rows >= 8, rows % 8 == 0, cols)
        if best_key is None or key > best_key:
            best, best_key = s1, key
    return best


def _choose_tiles(R: int, C: int, itemsize: int, s1: int):
    # --- row tile ---
    if s1 > 1:
        cap = min(_ROW_CAP, s1)
        tR = None
        for d in range(cap, 0, -1):
            if s1 % d == 0 and (d % 8 == 0 or (d == s1 and d == R)):
                tR = d
                break
        if tR is None:                   # guarded by _choose_fold; keep safe
            tR = s1
    else:
        tR = R if R <= _ROW_CAP else _ROW_CAP
    # --- column tile: lane-dense multiple of 128, block ~ _BLOCK_BYTE_TARGET ---
    if C >= 128:
        budget_cols = max(128, _round_down(_BLOCK_BYTE_TARGET // (tR * itemsize), 128))
        tC = min(_round_down(C, 128), budget_cols)
    else:
        tC = C
    # --- megacore: ensure >=2 grid steps along a 'parallel' axis ---
    if pl.cdiv(C, tC) * pl.cdiv(R, tR) < 2 and tC >= 256:
        tC = _round_down(tC // 2, 128)
    return tR, tC


# ----------------------------------------------------------------------------
# Dropout helpers
# ----------------------------------------------------------------------------
def _dropout_threshold_u32(dropout_p: float) -> int:
    return min(int(round(dropout_p * float(2 ** 32))), 2 ** 32 - 1)


def _apply_dropout(y, bits_u32, dropout_p: float):
    """Inverted dropout with a single uint32 threshold compare per element."""
    thresh = jnp.uint32(_dropout_threshold_u32(dropout_p))
    keep = bits_u32 >= thresh                       # P(keep) = 1 - p
    return jnp.where(keep, y * (1.0 / (1.0 - dropout_p)), 0.0)


# ----------------------------------------------------------------------------
# Kernels
# ----------------------------------------------------------------------------
def _pe_add_kernel(x_ref, pe_ref, o_ref):
    # Eval path: pure streaming add.  pe_ref rows broadcast against x_ref rows.
    o_ref[...] = (x_ref[...] + pe_ref[...]).astype(o_ref.dtype)


def _pe_dropout_prng_kernel(seed_ref, x_ref, pe_ref, o_ref, *, dropout_p: float):
    y = x_ref[...] + pe_ref[...]
    step = pl.program_id(0) * pl.num_programs(1) + pl.program_id(1)
    # Golden-ratio odd multiplier decorrelates the per-tile seeds.
    mixed = seed_ref[0] ^ (step * jnp.int32(-1640531527))
    pltpu.prng_seed(mixed)
    bits = pltpu.prng_random_bits(y.shape)
    if bits.dtype != jnp.uint32:
        bits = pltpu.bitcast(bits, jnp.uint32)      # avoid signed-compare hazard
    o_ref[...] = _apply_dropout(y, bits, dropout_p).astype(o_ref.dtype)


def _pe_dropout_hostbits_kernel(x_ref, pe_ref, bits_ref, o_ref, *, dropout_p: float):
    # Fallback for non-TPU backends (no hardware-PRNG lowering).
    y = x_ref[...] + pe_ref[...]
    o_ref[...] = _apply_dropout(y, bits_ref[...], dropout_p).astype(o_ref.dtype)


# ----------------------------------------------------------------------------
# Wrapper
# ----------------------------------------------------------------------------
def positional_encoding(x: jnp.ndarray,
                        pe_table: jnp.ndarray,
                        *,
                        dropout_p: float = 0.1,
                        train: bool = False,
                        seed: int = 0,
                        donate_x: bool = False) -> jnp.ndarray:
    """x: (B, S, D). pe_table: (max_len, D). Returns (B, S, D)."""
    B, S, D = x.shape
    itemsize = jnp.dtype(x.dtype).itemsize

    # Small-batch fold of the sequence into the row axis (sublane packing).
    s1 = _choose_fold(B, S, D)
    s2 = S // s1
    R, C = B * s1, s2 * D

    x2 = x.reshape(R, C)                                     # free reshape
    pe2 = pe_table[:S, :].astype(jnp.float32).reshape(s1, C)

    tR, tC = _choose_tiles(R, C, itemsize, s1)
    grid = (pl.cdiv(C, tC), pl.cdiv(R, tR))                  # cols outer -> pe tile reused

    pR = 1 if s1 == 1 else tR
    x_spec = pl.BlockSpec((tR, tC), lambda c, r, *_: (r, c))
    o_spec = pl.BlockSpec((tR, tC), lambda c, r, *_: (r, c))
    if s1 == 1 or tR == s1:
        pe_spec = pl.BlockSpec((pR, tC), lambda c, r, *_: (0, c))
    else:
        period = s1 // tR
        pe_spec = pl.BlockSpec((pR, tC), lambda c, r, *_: (r % period, c))

    apply_dropout = bool(train) and dropout_p > 0.0
    on_tpu = jax.default_backend() == "tpu"
    use_hostbits = apply_dropout and not on_tpu

    # Explicit VMEM budget (double-buffered x, out [, bits] + pe) with margin.
    blk_bytes = tR * tC * itemsize
    pe_bytes = pR * tC * 4
    vmem_needed = 2 * (2 * blk_bytes + pe_bytes)
    if use_hostbits:
        vmem_needed += 2 * tR * tC * 4
    vmem_limit = int(min(max(vmem_needed + (8 << 20), _VMEM_LIMIT_FLOOR),
                         _VMEM_LIMIT_CEIL))
    cparams = pltpu.CompilerParams(
        dimension_semantics=("parallel", "parallel"),
        vmem_limit_bytes=vmem_limit)

    out_shape = jax.ShapeDtypeStruct((R, C), x.dtype)

    if not apply_dropout:
        # Eval path: plain grid spec, no dead scalar prefetch.
        out2 = pl.pallas_call(
            _pe_add_kernel,
            out_shape=out_shape,
            grid=grid,
            in_specs=[x_spec, pe_spec],
            out_specs=o_spec,
            compiler_params=cparams,
            input_output_aliases=({0: 0} if donate_x else {}),
        )(x2, pe2)
    elif not use_hostbits:
        # TODO(synk): trace-time backend check cannot detect
        # pltpu.force_tpu_interpret_mode() on a TPU host; use the host-bits
        # path explicitly if running under the interpreter.
        seed_arr = jnp.array([seed], dtype=jnp.int32)
        kernel = functools.partial(_pe_dropout_prng_kernel, dropout_p=float(dropout_p))
        out2 = pl.pallas_call(
            kernel,
            out_shape=out_shape,
            grid_spec=pltpu.PrefetchScalarGridSpec(
                num_scalar_prefetch=1,
                grid=grid,
                in_specs=[x_spec, pe_spec],
                out_specs=o_spec,
            ),
            compiler_params=cparams,
            input_output_aliases=({1: 0} if donate_x else {}),
        )(seed_arr, x2, pe2)
    else:
        bits = jax.random.bits(jax.random.PRNGKey(seed), (R, C), dtype=jnp.uint32)
        kernel = functools.partial(_pe_dropout_hostbits_kernel, dropout_p=float(dropout_p))
        out2 = pl.pallas_call(
            kernel,
            out_shape=out_shape,
            grid=grid,
            in_specs=[x_spec, pe_spec,
                      pl.BlockSpec((tR, tC), lambda c, r, *_: (r, c))],
            out_specs=o_spec,
            compiler_params=cparams,
            input_output_aliases=({0: 0} if donate_x else {}),
        )(x2, pe2, bits)

    return out2.reshape(B, S, D)


# ----------------------------------------------------------------------------
# Demo / correctness check
# ----------------------------------------------------------------------------
if __name__ == "__main__":
    B, S, D = 2, 8, 32
    key = jax.random.PRNGKey(0)
    x = jax.random.normal(key, (B, S, D), dtype=jnp.float32)

    pe_table = _make_pe_table(dim_size=D, max_len=5000)

    # Eval mode: dropout is identity -> deterministic check vs pure-JAX reference.
    out = jax.block_until_ready(
        positional_encoding(x, pe_table, dropout_p=0.1, train=False)
    )
    ref = x + pe_table[None, :S, :]
    assert out.shape == (B, S, D) and out.dtype == jnp.float32
    assert jnp.allclose(out, ref, atol=1e-6, rtol=1e-6)

    # Training mode: elements are either dropped (exactly 0) or scaled by 1/(1-p).
    p = 0.1
    out_train = jax.block_until_ready(
        positional_encoding(x, pe_table, dropout_p=p, train=True, seed=123)
    )
    assert out_train.shape == (B, S, D)
    scaled = ref / (1.0 - p)
    ok = jnp.logical_or(out_train == 0.0,
                        jnp.isclose(out_train, scaled, atol=1e-5, rtol=1e-5))
    assert bool(jnp.all(ok))

    print("KERNEL_OK")
</pallas_src>

<mosaic_0001>
module attributes {stable_mosaic.version = 11 : i64} {
  func.func @_pe_add_kernel(%arg0: i32, %arg1: i32, %arg2: memref<2x128xf32, #tpu.memory_space<vmem>>, %arg3: memref<1x128xf32, #tpu.memory_space<vmem>>, %arg4: memref<2x128xf32, #tpu.memory_space<vmem>>) attributes {dimension_semantics = [#tpu.dimension_semantics<parallel>, #tpu.dimension_semantics<parallel>], iteration_bounds = array<i64: 2, 1>, scalar_prefetch = 0 : i64, scratch_operands = 0 : i64, tpu.core_type = #tpu.core_type<tc>, window_params = [{transform_indices = @transform_0, window_bounds = array<i64: 2, 128>}, {transform_indices = @transform_1, window_bounds = array<i64: 1, 128>}, {transform_indices = @transform_2, window_bounds = array<i64: 2, 128>}]} {
    %c0 = arith.constant 0 : index
    %c0_0 = arith.constant 0 : index
    %0 = vector.load %arg2[%c0, %c0_0] : memref<2x128xf32, #tpu.memory_space<vmem>>, vector<2x128xf32>
    %c0_1 = arith.constant 0 : index
    %c0_2 = arith.constant 0 : index
    %1 = vector.load %arg3[%c0_1, %c0_2] : memref<1x128xf32, #tpu.memory_space<vmem>>, vector<1x128xf32>
    %2 = vector.broadcast %1 : vector<1x128xf32> to vector<2x128xf32>
    %3 = arith.addf %0, %2 : vector<2x128xf32>
    %c0_3 = arith.constant 0 : index
    %c0_4 = arith.constant 0 : index
    %4 = vector.load %arg4[%c0_3, %c0_4] : memref<2x128xf32, #tpu.memory_space<vmem>>, vector<2x128xf32>
    tpu.vector_store %arg4[%c0_3, %c0_4], %3 {strides = array<i32>} : memref<2x128xf32, #tpu.memory_space<vmem>>, vector<2x128xf32>,
    return
  }
  func.func @transform_0(%arg0: i32, %arg1: i32) -> (i32, i32) {
    %c0_i32 = arith.constant 0 : i32
    return %arg1, %arg0 : i32, i32
  }
  func.func @transform_1(%arg0: i32, %arg1: i32) -> (i32, i32) {
    %c0_i32 = arith.constant 0 : i32
    %c0_i32_0 = arith.constant 0 : i32
    return %c0_i32, %arg0 : i32, i32
  }
  func.func @transform_2(%arg0: i32, %arg1: i32) -> (i32, i32) {
    %c0_i32 = arith.constant 0 : i32
    return %arg1, %arg0 : i32, i32
  }
}

</mosaic_0001>

<bundles_post_ra>
// kernel: tpu_custom_call.1
= control target key start
LH: loop header
LB: loop body
LE: loop exit
PB: predicated region body
PF: predicated region fallthrough
CT: control target
= control target key end

     0   :  { %7 = vsyncpa [#allocation3], 0  ;;  %s692_s0 = inlined_call_operand.hbm [shape: f32[2,256], index: 0, kind: input, shape index: {}]   ;;  %s693_s1 = inlined_call_operand.vmem [shape: f32[1,256], index: 1, kind: input, shape index: {}]   ;;  %s694_s2 = inlined_call_operand.hbm [shape: f32[2,256], index: 2, kind: output, shape index: {}]  }
   0x1   :  { %9 = vsyncpa [#allocation3 + $0x1], 0 }
   0x2   :  { %10 = vsyncpa [#allocation4], 0 }
   0x3   :  { %12 = vsyncpa [#allocation4 + $0x1], 0  ;;  %s515_s9 = smov 0   ;;  %s517_s10 = smov 0  }
   0x4   :  { %s519_s11 = smov 0   ;;  %s521_s12 = smov 0  }
   0x5   :  { %s523_s13 = smov 0   ;;  %s525_s14 = smov 0  }
   0x6 LB: > { %s308_s15 = sadd.s32 4294967295, %s496_s14   ;;  %s309_s16 = sadd.s32 4294967294, %s496_s14   ;;  %s496_s14 = sphi %s525_s14, %s18_s14   ;;  %s492_s13 = sphi %s523_s13, %s710_s13   ;;  %s488_s12 = sphi %s521_s12, %s709_s12   ;;  %s484_s11 = sphi %s519_s11, %s708_s11   ;;  %s480_s10 = sphi %s517_s10, %s707_s10   ;;  %s476_s9 = sphi %s515_s9, %s706_s9  }
   0x7   : > { %s30_s17 = sadd.s32 1, %s492_s13  ;;  %s39_s18 = sadd.s32 1, %s484_s11 }
   0x8   : > { %p32_p0 = scmp.ge.s32.totalorder %s30_s17, 2  ;;  %p46_p1 = scmp.ne.s32.totalorder %s484_s11, %s480_s10 }
   0x9   : > { %p47_p2 = scmp.eq.s32.totalorder %s496_s14, 0  ;;  %p52_p3 = scmp.ne.s32.totalorder %s480_s10, %s476_s9 }
   0xa   : > { %s712_s17 = smov (%p32_p0, %s30_s17), 0  ;;  %p53_p5 = scmp.eq.s32.totalorder %s308_s15, 0 }
   0xb   : > { %p556_p4 = por %p47_p2, %p46_p1  ;;  %s35_s20 = ssub.s32 %s492_s13, %s712_s17 }
   0xc   : > { %p104_p6 = scmp.eq.s32.totalorder %s308_s15, 1  ;;  %p37_p7 = scmp.eq.s32.totalorder %s35_s20, 0 }
   0xd   : > { %p562_p8 = por %p53_p5, %p52_p3  ;;  %p110_p10 = scmp.eq.s32.totalorder %s309_s16, 1 }
   0xe   : > { %p566_p9 = por %p104_p6, %p46_p1  ;;  %p334_p13 = scmp.lt.s32.totalorder %s496_s14, 2 }
   0xf   : > { %s571_s23 = scalar_select %p37_p7, %s484_s11, %s39_s18  }
  0x10   : > { %s698_s22 = scalar_select %p566_p9, 1, 0 }
  0x11   : > { %p573_p11 = por %p110_p10, %p52_p3  ;;  %s130_s25 = sand.u32 1, %s484_s11  }
  0x12   : > { %s312_s26 = sshll.u32 %s130_s25, 1  ;;  %s313_s27 = sshll.u32 %s492_s13, 5 }
  0x13   : > { %s699_s24 = scalar_select %p573_p11, 1, 0 }
  0x14   : > { %s584_s30 = scalar_lea.hbm %s692_s0, %s313_s27  ;;  %s134_s3 = scalar_lea.vmem [#allocation2], %s312_s26 }
  0x15   : > { %s143_s4 = sshll.u32 %s134_s3, 4  ;;  %p590_p0 = pnand %p334_p13, %p556_p4  ;;  %s586_s4 = int_to_ptr.vmem [resolvable:$true] %s143_s4 }
  0x16   : > { %s131_s6 = scalar_lea.sflag [#allocation3], %s130_s25  ;;  %s384_s7 = scalar_lea.hbm %s584_s30, 32 }
  0x17   : > { %p385_p3 = scmp.ne.s32.totalorder %s584_s30, %s384_s7  ;;  %p386_p5 = pneg %p590_p0 }
  0x18   : > { %s389_s16 = scalar_lea.hbm %s692_s0, 64  ;;  %p390_p4 = scmp.lt.u32.totalorder %s584_s30, %s692_s0 }
  0x19   : > { %p387_p6 = pnand %p386_p5, %p385_p3  ;;  %p391_p10 = scmp.lt.u32.totalorder %s389_s16, %s384_s7 }
  0x1a   : > { %p393_p12 = scmp.lt.u32.totalorder %s384_s7, %s584_s30 }
  0x1b   : > { %p388_p7 = pneg %p387_p6  ;;  %p392_p13 = por %p391_p10, %p390_p4 }
  0x1d   : > { %p394_p1 = por %p393_p12, %p392_p13 }
  0x1f   : > { %p395_p2 = pnand %p394_p1, %p388_p7 }
  0x21   : > { %398 = shalt.err (!%p395_p2)
}
  0x22   : > { %s399_s20 = scalar_lea.vmem %s586_s4, 32  ;;  %s498_s25 = smov [#allocation2]  }
  0x23   : > { %p400_p3 = scmp.ne.s32.totalorder %s586_s4, %s399_s20  ;;  %s404_s26 = sshll.u32 %s498_s25, 4  ;;  %s405_s26 = int_to_ptr.vmem [resolvable:$false] %s404_s26 }
  0x24   : > { %s406_s27 = scalar_lea.vmem %s405_s26, 64  ;;  %p407_p9 = scmp.lt.s32.totalorder %s586_s4, %s405_s26 }
  0x25   : > { %p402_p6 = pnand %p400_p3, %p386_p5  ;;  %p408_p4 = scmp.lt.s32.totalorder %s406_s27, %s399_s20 }
  0x27   : > { %p403_p11 = pneg %p402_p6  ;;  %p409_p10 = por %p408_p4, %p407_p9 }
  0x29   : > { %p410_p12 = pnand %p409_p10, %p403_p11 }
  0x2b   : > { %413 = shalt.err (!%p410_p12)
}
  0x2c   : > { %329 = dma.hbm_to_vmem [thread:$0]  (!%p590_p0), %s584_s30, 32, %s586_s4, %s131_s6  }
  0x2d   : > { %p701_p1 = scmp.lt.s32.totalorder %s496_s14, 3  ;;  %p702_p2 = scmp.ge.s32.totalorder %s496_s14, 1 }
  0x2f   : > { %p155_p5 = pnand %p702_p2, %p701_p1 }
  0x30   : > { %s626_s28 = sand.u32 (!%p155_p5), 1, %s480_s10  }
  0x31   : > { %158 = sbr.rel (%p155_p5) target bundleno = 85 (0x55), region = 28  ;;  %s315_s29 = sshll.u32 (!%p155_p5), %s626_s28, 1 }
  0x32   : > { %s161_s3 = scalar_lea.sflag (!%p155_p5), [#allocation3], %s626_s28  ;;  %s164_s7 = scalar_lea.vmem (!%p155_p5), [#allocation2], %s315_s29 }
  0x38   : > { %467 = dma.done.wait (%p562_p8), %s161_s3, 32  }
  0x39   : > { %469 = vsyncadd (%p562_p8), %s161_s3, 4294967264  ;;  %p188_p9 = scmp.lt.s32.totalorder %s488_s12, 1  ;;  %s187_s8 = scalar_lea.vmem [#allocation5], %s315_s29  ;;  %v191_v0 = vld [vmem:[%s164_s7] sm:$0x3] }
  0x3a   : > { %s217_s15 = sshll.u32 %s187_s8, 4  ;;  %s319_s16 = sshll.u32 %s488_s12, 5  ;;  %s640_s15 = int_to_ptr.vmem [resolvable:$true] %s217_s15 }
  0x3b   : > { %s189_s30 = scalar_select %p188_p9, %s488_s12, 1 }
  0x3c   : > { %s645_s19 = scalar_lea.hbm %s694_s2, %s319_s16  ;;  %s202_s20 = scalar_lea.sflag [#allocation4], %s626_s28 }
  0x3d   : > { %s190_s6 = scalar_lea.vmem %s693_s1, %s189_s30  ;;  %s414_s25 = scalar_lea.vmem %s640_s15, 32 }
  0x3e   : > { %v317_v1 = vld [vmem:[%s190_s6] ss:$0 sm:$0xff]  ;;  %p415_p8 = scmp.ne.s32.totalorder %s640_s15, %s414_s25  ;;  %p703_p11 = scmp.ne.s32.totalorder %s698_s22, 0 }
  0x3f   : > { %v199_v2 = vadd.f32 %v317_v1, %v191_v0  ;;  %s499_s12 = smov [#allocation5]  }
  0x40   : > { %p416_p0 = pnand %p415_p8, %p703_p11  ;;  %s418_s26 = sshll.u32 %s499_s12, 4  ;;  %s419_s26 = int_to_ptr.vmem [resolvable:$false] %s418_s26 }
  0x41   : > { %200 = vst [vmem:[%s187_s8] sm:$0x3] %v199_v2  ;;  %s420_s27 = scalar_lea.vmem %s419_s26, 64  ;;  %p421_p13 = scmp.lt.s32.totalorder %s640_s15, %s419_s26 }
  0x42   : > { %p417_p7 = pneg %p416_p0  ;;  %p422_p3 = scmp.lt.s32.totalorder %s420_s27, %s414_s25 }
  0x44   : > { %p423_p6 = por %p422_p3, %p421_p13 }
  0x46   : > { %p424_p4 = pnand %p423_p6, %p417_p7 }
  0x48   : > { %427 = shalt.err (!%p424_p4)
}
  0x49   : > { %s428_s28 = scalar_lea.hbm %s645_s19, 32  ;;  %s432_s7 = scalar_lea.hbm %s694_s2, 64 }
  0x4a   : > { %p429_p10 = scmp.ne.s32.totalorder %s645_s19, %s428_s28  ;;  %p433_p2 = scmp.lt.u32.totalorder %s645_s19, %s694_s2 }
  0x4b   : > { %p434_p5 = scmp.lt.u32.totalorder %s432_s7, %s428_s28  ;;  %p436_p8 = scmp.lt.u32.totalorder %s428_s28, %s645_s19 }
  0x4c   : > { %p430_p12 = pnand %p429_p10, %p703_p11 }
  0x4d   : > { %p435_p9 = por %p434_p5, %p433_p2 }
  0x4e   : > { %p431_p1 = pneg %p430_p12 }
  0x4f   : > { %p437_p0 = por %p436_p8, %p435_p9 }
  0x51   : > { %p438_p7 = pnand %p437_p0, %p431_p1 }
  0x53   : > { %441 = shalt.err (!%p438_p7)
}
  0x54   : > { %324 = dma.vmem_to_hbm [thread:$0]  (%p703_p11), %s640_s15, 32, %s645_s19, %s202_s20  }
  0x55 PF: > { %s229_s5 = sand.u32 1, %s476_s9   ;;  %p704_p13 = scmp.ne.s32.totalorder %s699_s24, 0 }
  0x56   : > { %p705_p3 = scmp.ge.s32.totalorder %s496_s14, 2  ;;  %s230_s6 = scalar_lea.sflag [#allocation4], %s229_s5 }
  0x58   : > { %p331_p6 = pnand %p705_p3, %p704_p13 }
  0x5a   : > { %471 = dma.done.wait (!%p331_p6), %s230_s6, 32  }
  0x5b   : > { %473 = vsyncadd (!%p331_p6), %s230_s6, 4294967264  ;;  %s18_s14 = sadd.s32 1, %s496_s14   ;;  %s706_s9 = smov %s480_s10 }
  0x5c   : > { %p15_p4 = scmp.ge.s32.totalorder %s18_s14, 4   ;;  %s707_s10 = smov %s484_s11 }
  0x5d   : > { %s708_s11 = smov %s571_s23  ;;  %s709_s12 = smov %s492_s13 }
  0x5e   : > { %s710_s13 = smov %s712_s17  ;;  %17 = sbr.rel (!%p15_p4) target bundleno = 6 (0x6), region = 76 }
  0x65   :  { %235 = vsyncpa [#allocation3], 1 }
  0x66   :  { %237 = vsyncpa [#allocation3 + $0x1], 1 }
  0x67   :  { %238 = vsyncpa [#allocation4], 1 }
  0x68   :  { %240 = vsyncpa [#allocation4 + $0x1], 1 }

</bundles_post_ra>
